<compile_context>
chip_gen: v7x
topology: tpu7x:2x2x1
jax: 0.10.0
libtpu: 0.0.40
codegen_flags: <defaults>
</compile_context>

<pallas_src>
import jax
import jax.numpy as jnp
from jax.experimental import pallas as pl
from jax.experimental.pallas import tpu as pltpu


def critic_kernel(x_ref, w1_ref, b1_ref, w2_ref, b2_ref, w3_ref, b3_ref, o_ref):
    # fc1: bf16 MXU inputs, f32 accumulate; bias add + ReLU in f32 on the VPU.
    x = x_ref[...].astype(jnp.bfloat16)
    w1 = w1_ref[...].astype(jnp.bfloat16)
    h1 = jnp.dot(x, w1, preferred_element_type=jnp.float32) + b1_ref[...]
    h1 = jnp.maximum(h1, 0.0)

    # fc2: same bf16-in / f32-acc MXU pattern.
    w2 = w2_ref[...].astype(jnp.bfloat16)
    h2 = jnp.dot(h1.astype(jnp.bfloat16), w2,
                 preferred_element_type=jnp.float32) + b2_ref[...]
    h2 = jnp.maximum(h2, 0.0)

    # fc3 (64 -> 1): VPU multiply + XLU cross-lane reduce instead of a
    # 1-output-lane MXU matmul. w3_ref is the (1, 64) row view of w3.
    out = jnp.sum(h2 * w3_ref[...], axis=-1, keepdims=True) + b3_ref[...]
    o_ref[...] = out.astype(o_ref.dtype)


def _round_up(n, m):
    return ((n + m - 1) // m) * m


def critic_forward(x, params, *, tile_m=1024):
    w1, b1, w2, b2, w3, b3 = params
    batch, n_states = x.shape

    # Present fc3's weight as a lane-major (1, 64) row for the VPU/XLU path.
    w3_row = w3.reshape(1, -1)

    # Batch tile: multiple of 8 sublanes, capped by tile_m; pad batch to a
    # whole number of tiles (zero rows are sliced off after the call).
    tm = min(tile_m, _round_up(batch, 8))
    padded = _round_up(batch, tm)
    if padded != batch:
        x = jnp.pad(x, ((0, padded - batch), (0, 0)))

    out = pl.pallas_call(
        critic_kernel,
        out_shape=jax.ShapeDtypeStruct((padded, 1), jnp.float32),
        grid=(padded // tm,),
        in_specs=[
            # x: streamed batch tiles (double-buffered by the Pallas pipeline).
            pl.BlockSpec((tm, n_states), lambda i: (i, 0)),
            # Weights/biases: constant block index -> loaded once, resident in VMEM.
            pl.BlockSpec(w1.shape, lambda i: (0, 0)),
            pl.BlockSpec(b1.shape, lambda i: (0, 0)),
            pl.BlockSpec(w2.shape, lambda i: (0, 0)),
            pl.BlockSpec(b2.shape, lambda i: (0, 0)),
            pl.BlockSpec(w3_row.shape, lambda i: (0, 0)),
            pl.BlockSpec(b3.shape, lambda i: (0, 0)),
        ],
        out_specs=pl.BlockSpec((tm, 1), lambda i: (i, 0)),
        compiler_params=pltpu.CompilerParams(
            dimension_semantics=("parallel",),  # megacore sharding on v7x
        ),
    )(x, w1, b1, w2, b2, w3_row, b3)

    return out[:batch] if padded != batch else out


def init_params(key, n_states):
    # Deterministic synthetic init mimicking PyTorch Linear's
    # U(-1/sqrt(fan_in), 1/sqrt(fan_in)) for both weight and bias.
    def linear(key, fan_in, fan_out):
        kw, kb = jax.random.split(key)
        bound = 1.0 / jnp.sqrt(jnp.float32(fan_in))
        # Stored as (in, out): equivalent to PyTorch's (out, in) weight transposed.
        w = jax.random.uniform(kw, (fan_in, fan_out), jnp.float32, -bound, bound)
        b = jax.random.uniform(kb, (1, fan_out), jnp.float32, -bound, bound)
        return w, b

    k1, k2, k3 = jax.random.split(key, 3)
    w1, b1 = linear(k1, n_states, 64)
    w2, b2 = linear(k2, 64, 64)
    w3, b3 = linear(k3, 64, 1)
    return (w1, b1, w2, b2, w3, b3)


if __name__ == "__main__":
    key = jax.random.PRNGKey(0)
    k_params, k_x = jax.random.split(key)

    n_states = 16
    batch = 8

    params = init_params(k_params, n_states)
    x = jax.random.normal(k_x, (batch, n_states), jnp.float32)

    out = jax.block_until_ready(critic_forward(x, params))
    assert out.shape == (batch, 1)

    w1, b1, w2, b2, w3, b3 = params

    # Reference 1: mimics the kernel's precision (bf16 MXU inputs, f32 accumulate).
    def bdot(a, b):
        return jnp.dot(a.astype(jnp.bfloat16), b.astype(jnp.bfloat16),
                       preferred_element_type=jnp.float32)

    ref = jnp.maximum(bdot(x, w1) + b1, 0.0)
    ref = jnp.maximum(bdot(ref, w2) + b2, 0.0)
    ref = jnp.sum(ref * w3.reshape(1, -1), axis=-1, keepdims=True) + b3
    assert jnp.allclose(out, ref, atol=2e-3, rtol=2e-3)

    # Reference 2: full-f32 PyTorch-equivalent forward (looser tolerance, since the
    # kernel deliberately uses bf16 MXU inputs).
    ref32 = jnp.maximum(x @ w1 + b1, 0.0)
    ref32 = jnp.maximum(ref32 @ w2 + b2, 0.0)
    ref32 = ref32 @ w3 + b3
    assert jnp.allclose(out, ref32, atol=5e-2, rtol=5e-2)

    print("KERNEL_OK")
</pallas_src>

<mosaic_0001>
module attributes {stable_mosaic.version = 11 : i64} {
  func.func @critic_kernel(%arg0: i32, %arg1: memref<8x16xf32, #tpu.memory_space<vmem>>, %arg2: memref<16x64xf32, #tpu.memory_space<vmem>>, %arg3: memref<1x64xf32, #tpu.memory_space<vmem>>, %arg4: memref<64x64xf32, #tpu.memory_space<vmem>>, %arg5: memref<1x64xf32, #tpu.memory_space<vmem>>, %arg6: memref<1x64xf32, #tpu.memory_space<vmem>>, %arg7: memref<1x1xf32, #tpu.memory_space<vmem>>, %arg8: memref<8x1xf32, #tpu.memory_space<vmem>>) attributes {dimension_semantics = [#tpu.dimension_semantics<parallel>], iteration_bounds = array<i64: 1>, scalar_prefetch = 0 : i64, scratch_operands = 0 : i64, tpu.core_type = #tpu.core_type<tc>, window_params = [{transform_indices = @transform_0, window_bounds = array<i64: 8, 16>}, {pipeline_mode = #tpu.pipeline_mode<synchronous>, transform_indices = @transform_1, window_bounds = array<i64: 16, 64>}, {pipeline_mode = #tpu.pipeline_mode<synchronous>, transform_indices = @transform_2, window_bounds = array<i64: 1, 64>}, {pipeline_mode = #tpu.pipeline_mode<synchronous>, transform_indices = @transform_3, window_bounds = array<i64: 64, 64>}, {pipeline_mode = #tpu.pipeline_mode<synchronous>, transform_indices = @transform_4, window_bounds = array<i64: 1, 64>}, {pipeline_mode = #tpu.pipeline_mode<synchronous>, transform_indices = @transform_5, window_bounds = array<i64: 1, 64>}, {pipeline_mode = #tpu.pipeline_mode<synchronous>, transform_indices = @transform_6, window_bounds = array<i64: 1, 1>}, {transform_indices = @transform_7, window_bounds = array<i64: 8, 1>}]} {
    %c0 = arith.constant 0 : index
    %c0_0 = arith.constant 0 : index
    %0 = vector.load %arg1[%c0, %c0_0] : memref<8x16xf32, #tpu.memory_space<vmem>>, vector<8x16xf32>
    %1 = arith.truncf %0 : vector<8x16xf32> to vector<8x16xbf16>
    %c0_1 = arith.constant 0 : index
    %c0_2 = arith.constant 0 : index
    %2 = vector.load %arg2[%c0_1, %c0_2] : memref<16x64xf32, #tpu.memory_space<vmem>>, vector<16x64xf32>
    %3 = arith.truncf %2 : vector<16x64xf32> to vector<16x64xbf16>
    %cst = arith.constant dense<0.000000e+00> : vector<8x64xf32>
    %4 = tpu.matmul %1, %3, %cst {dimension_numbers = #tpu.dot_dimension_numbers<[1], [0], [0], [1], [0, 0, 1, 1], [], []>} : vector<8x16xbf16>, vector<16x64xbf16>, vector<8x64xf32> -> vector<8x64xf32>
    %c0_3 = arith.constant 0 : index
    %c0_4 = arith.constant 0 : index
    %5 = vector.load %arg3[%c0_3, %c0_4] : memref<1x64xf32, #tpu.memory_space<vmem>>, vector<1x64xf32>
    %6 = vector.broadcast %5 : vector<1x64xf32> to vector<8x64xf32>
    %7 = arith.addf %4, %6 : vector<8x64xf32>
    %cst_5 = arith.constant 0.000000e+00 : f32
    %8 = vector.broadcast %cst_5 : f32 to vector<8x64xf32>
    %9 = arith.maximumf %7, %8 : vector<8x64xf32>
    %c0_6 = arith.constant 0 : index
    %c0_7 = arith.constant 0 : index
    %10 = vector.load %arg4[%c0_6, %c0_7] : memref<64x64xf32, #tpu.memory_space<vmem>>, vector<64x64xf32>
    %11 = arith.truncf %10 : vector<64x64xf32> to vector<64x64xbf16>
    %12 = arith.truncf %9 : vector<8x64xf32> to vector<8x64xbf16>
    %cst_8 = arith.constant dense<0.000000e+00> : vector<8x64xf32>
    %13 = tpu.matmul %12, %11, %cst_8 {dimension_numbers = #tpu.dot_dimension_numbers<[1], [0], [0], [1], [0, 0, 1, 1], [], []>} : vector<8x64xbf16>, vector<64x64xbf16>, vector<8x64xf32> -> vector<8x64xf32>
    %c0_9 = arith.constant 0 : index
    %c0_10 = arith.constant 0 : index
    %14 = vector.load %arg5[%c0_9, %c0_10] : memref<1x64xf32, #tpu.memory_space<vmem>>, vector<1x64xf32>
    %15 = vector.broadcast %14 : vector<1x64xf32> to vector<8x64xf32>
    %16 = arith.addf %13, %15 : vector<8x64xf32>
    %cst_11 = arith.constant 0.000000e+00 : f32
    %17 = vector.broadcast %cst_11 : f32 to vector<8x64xf32>
    %18 = arith.maximumf %16, %17 : vector<8x64xf32>
    %c0_12 = arith.constant 0 : index
    %c0_13 = arith.constant 0 : index
    %19 = vector.load %arg6[%c0_12, %c0_13] : memref<1x64xf32, #tpu.memory_space<vmem>>, vector<1x64xf32>
    %20 = vector.broadcast %19 : vector<1x64xf32> to vector<8x64xf32>
    %21 = arith.mulf %18, %20 : vector<8x64xf32>
    %cst_14 = arith.constant dense<0.000000e+00> : vector<8xf32>
    %22 = vector.multi_reduction <add>, %21, %cst_14 [1] : vector<8x64xf32> to vector<8xf32>
    %23 = vector.shape_cast %22 : vector<8xf32> to vector<8x1xf32>
    %c0_15 = arith.constant 0 : index
    %c0_16 = arith.constant 0 : index
    %24 = vector.load %arg7[%c0_15, %c0_16] : memref<1x1xf32, #tpu.memory_space<vmem>>, vector<1x1xf32>
    %25 = vector.broadcast %24 : vector<1x1xf32> to vector<8x1xf32>
    %26 = arith.addf %23, %25 : vector<8x1xf32>
    %c0_17 = arith.constant 0 : index
    %c0_18 = arith.constant 0 : index
    %27 = vector.load %arg8[%c0_17, %c0_18] : memref<8x1xf32, #tpu.memory_space<vmem>>, vector<8x1xf32>
    tpu.vector_store %arg8[%c0_17, %c0_18], %26 {strides = array<i32>} : memref<8x1xf32, #tpu.memory_space<vmem>>, vector<8x1xf32>,
    return
  }
  func.func @transform_0(%arg0: i32) -> (i32, i32) {
    %c0_i32 = arith.constant 0 : i32
    %c0_i32_0 = arith.constant 0 : i32
    return %arg0, %c0_i32 : i32, i32
  }
  func.func @transform_1(%arg0: i32) -> (i32, i32) {
    %c0_i32 = arith.constant 0 : i32
    %c0_i32_0 = arith.constant 0 : i32
    %c0_i32_1 = arith.constant 0 : i32
    return %c0_i32, %c0_i32_0 : i32, i32
  }
  func.func @transform_2(%arg0: i32) -> (i32, i32) {
    %c0_i32 = arith.constant 0 : i32
    %c0_i32_0 = arith.constant 0 : i32
    %c0_i32_1 = arith.constant 0 : i32
    return %c0_i32, %c0_i32_0 : i32, i32
  }
  func.func @transform_3(%arg0: i32) -> (i32, i32) {
    %c0_i32 = arith.constant 0 : i32
    %c0_i32_0 = arith.constant 0 : i32
    %c0_i32_1 = arith.constant 0 : i32
    return %c0_i32, %c0_i32_0 : i32, i32
  }
  func.func @transform_4(%arg0: i32) -> (i32, i32) {
    %c0_i32 = arith.constant 0 : i32
    %c0_i32_0 = arith.constant 0 : i32
    %c0_i32_1 = arith.constant 0 : i32
    return %c0_i32, %c0_i32_0 : i32, i32
  }
  func.func @transform_5(%arg0: i32) -> (i32, i32) {
    %c0_i32 = arith.constant 0 : i32
    %c0_i32_0 = arith.constant 0 : i32
    %c0_i32_1 = arith.constant 0 : i32
    return %c0_i32, %c0_i32_0 : i32, i32
  }
  func.func @transform_6(%arg0: i32) -> (i32, i32) {
    %c0_i32 = arith.constant 0 : i32
    %c0_i32_0 = arith.constant 0 : i32
    %c0_i32_1 = arith.constant 0 : i32
    return %c0_i32, %c0_i32_0 : i32, i32
  }
  func.func @transform_7(%arg0: i32) -> (i32, i32) {
    %c0_i32 = arith.constant 0 : i32
    %c0_i32_0 = arith.constant 0 : i32
    return %arg0, %c0_i32 : i32, i32
  }
}

</mosaic_0001>

<bundles_post_ra>
// kernel: tpu_custom_call.1
= control target key start
LH: loop header
LB: loop body
LE: loop exit
PB: predicated region body
PF: predicated region fallthrough
CT: control target
= control target key end

     0   :  { %s429_s0 = inlined_call_operand.hbm [shape: f32[8,16], index: 0, kind: input, shape index: {}]   ;;  %s430_s1 = inlined_call_operand.hbm [shape: f32[16,64], index: 1, kind: input, shape index: {}]   ;;  %s431_s2 = inlined_call_operand.vmem [shape: f32[1,64], index: 2, kind: input, shape index: {}]   ;;  %s432_s3 = inlined_call_operand.hbm [shape: f32[64,64], index: 3, kind: input, shape index: {}]   ;;  %s433_s4 = inlined_call_operand.vmem [shape: f32[1,64], index: 4, kind: input, shape index: {}]   ;;  %s434_s5 = inlined_call_operand.vmem [shape: f32[1,64], index: 5, kind: input, shape index: {}]   ;;  %s435_s6 = inlined_call_operand.<no memory space> [shape: f32[1,1], index: 6, kind: input, shape index: {}]   ;;  %s436_s7 = inlined_call_operand.vmem [shape: f32[8,1], index: 7, kind: output, shape index: {}]  }
   0x1   :  { %v12_v0 = vstv %s435_s6 }
   0x2   :  { %13 = vst [vmem:[#allocation2] sm:$0x1] %v12_v0 }
   0x3   :  { %14 = vsyncpa [#allocation4], 0 }
   0x4   :  { %15 = vsyncpa [#allocation6], 0  ;;  %s325_s26 = smov [#allocation5]   ;;  %s255_s30 = scalar_lea.hbm %s430_s1, 256 }
   0x5   :  { %s31_s27 = sshll.u32 %s325_s26, 4  ;;  %p256_p0 = scmp.ne.s32.totalorder %s430_s1, %s255_s30  ;;  %s32_s27 = int_to_ptr.vmem [resolvable:$true] %s31_s27 }
   0x6   :  { %p259_p1 = scmp.lt.u32.totalorder %s255_s30, %s430_s1 }
   0x8   :  { %p261_p2 = pnand %p259_p1, %p256_p0 }
   0xa   :  { %264 = shalt.err (!%p261_p2)
}
   0xb   :  { %s265_s6 = scalar_lea.vmem %s32_s27, 256  ;;  %p270_p4 = scmp.lt.s32.totalorder %s32_s27, %s32_s27 }
   0xc   :  { %p266_p3 = scmp.ne.s32.totalorder %s32_s27, %s265_s6  ;;  %p271_p5 = scmp.lt.s32.totalorder %s265_s6, %s265_s6 }
   0xe   :  { %p272_p6 = por %p271_p5, %p270_p4 }
  0x10   :  { %p273_p7 = pnand %p272_p6, %p266_p3 }
  0x12   :  { %276 = shalt.err (!%p273_p7)
}
  0x13   :  { %s326_s12 = smov 128   ;;  %s327_s13 = smov 8  }
  0x14   :  { %37 = dma.hbm_to_vmem [thread:$0]  %s430_s1, 256, %s32_s27, [#allocation6], %s326_s12, %s326_s12, %s327_s13  }
  0x15   :  { %s328_s16 = smov [#allocation3]   ;;  %s329_s18 = smov [#allocation7]  }
  0x16   :  { %s22_s17 = sshll.u32 %s328_s16, 4  ;;  %s45_s19 = sshll.u32 %s329_s18, 4  ;;  %s23_s17 = int_to_ptr.vmem [resolvable:$true] %s22_s17  ;;  %s46_s19 = int_to_ptr.vmem [resolvable:$true] %s45_s19 }
  0x17   :  { %s277_s22 = scalar_lea.hbm %s429_s0, 128 }
  0x18   :  { %p278_p8 = scmp.ne.s32.totalorder %s429_s0, %s277_s22  ;;  %p281_p9 = scmp.lt.u32.totalorder %s277_s22, %s429_s0 }
  0x1a   :  { %p283_p10 = pnand %p281_p9, %p278_p8 }
  0x1c   :  { %286 = shalt.err (!%p283_p10)
}
  0x1d   :  { %s287_s1 = scalar_lea.vmem %s23_s17, 128  ;;  %p292_p12 = scmp.lt.s32.totalorder %s23_s17, %s23_s17 }
  0x1e   :  { %p288_p11 = scmp.ne.s32.totalorder %s23_s17, %s287_s1  ;;  %p293_p13 = scmp.lt.s32.totalorder %s287_s1, %s287_s1 }
  0x20   :  { %p294_p0 = por %p293_p13, %p292_p12 }
  0x22   :  { %p295_p1 = pnand %p294_p0, %p288_p11 }
  0x24   :  { %298 = shalt.err (!%p295_p1)
}
  0x25   :  { %25 = dma.hbm_to_vmem [thread:$0]  %s429_s0, 128, %s23_s17, [#allocation4]  }
  0x26   :  { %s299_s8 = scalar_lea.hbm %s432_s3, 1024 }
  0x27   :  { %p300_p2 = scmp.ne.s32.totalorder %s432_s3, %s299_s8  ;;  %p303_p3 = scmp.lt.u32.totalorder %s299_s8, %s432_s3 }
  0x29   :  { %p305_p4 = pnand %p303_p3, %p300_p2 }
  0x2b   :  { %308 = shalt.err (!%p305_p4)
}
  0x2c   :  { %s309_s14 = scalar_lea.vmem %s46_s19, 1024  ;;  %p314_p6 = scmp.lt.s32.totalorder %s46_s19, %s46_s19 }
  0x2d   :  { %p310_p5 = scmp.ne.s32.totalorder %s46_s19, %s309_s14  ;;  %p315_p7 = scmp.lt.s32.totalorder %s309_s14, %s309_s14 }
  0x2f   :  { %p316_p8 = por %p315_p7, %p314_p6 }
  0x31   :  { %p317_p9 = pnand %p316_p8, %p310_p5 }
  0x33   :  { %320 = shalt.err (!%p317_p9)
}
  0x34   :  { %51 = dma.hbm_to_vmem [thread:$0]  %s432_s3, 1024, %s46_s19, [#allocation6], %s326_s12, %s326_s12, %s327_s13  }
  0x35   :  { %321 = dma.done.wait [#allocation4], 128  }
  0x36   :  { %322 = vsyncadd [#allocation4], 4294967168 }
  0x37   :  { %323 = dma.done.wait [#allocation6], 1280  }
  0x38   :  { %324 = vsyncadd [#allocation6], 4294966016  ;;  %v330_v1 = vmov 0.0   ;;  %vm331_vm0 = vmmov 0   ;;  %v70_v2 = vld [vmem:[#allocation5] sm:$0xff]  ;;  %v71_v3 = vld [vmem:[#allocation5 + $0x8] sm:$0xff] }
  0x39   :  { %230 = vmatprep.subr.bf16.mxu0 %v330_v1  ;;  %232 = vmatprep.mubr.msk.bf16.mxu0 %vm331_vm0, %v330_v1  ;;  %v68_v4 = vld [vmem:[#allocation3] sm:$0xff]  ;;  %v72_v5 = vpack.c.bf16 %v71_v3, %v70_v2  ;;  %v125_v6 = vld [vmem:[#allocation7] sm:$0xff]  ;;  %v127_v8 = vld [vmem:[#allocation7 + $0x10] sm:$0xff]  ;;  %vm80_vm1 = vcmask 130048   ;;  %vm145_vm2 = vcmask 523264   ;;  %vm209_vm3 = vcmask 7168  }
  0x3a   :  { %236 = vmatprep.subr.bf16.mxu1 %v330_v1  ;;  %244 = vmatprep.mubr.msk.bf16.mxu1 %vm331_vm0, %v330_v1  ;;  %v126_v7 = vld [vmem:[#allocation7 + $0x8] sm:$0xff]  ;;  %v69_v9 = vpack.c.bf16 %v68_v4, %v68_v4  ;;  %v128_v11 = vld [vmem:[#allocation7 + $0x18] sm:$0xff]  ;;  %v129_v13 = vld [vmem:[#allocation7 + $0x20] sm:$0xff] }
  0x3b   :  { %v133_v10 = vpack.c.bf16 %v126_v7, %v125_v6  ;;  %231 = vmatpush3.bf16.msra.mxu0 %v72_v5  ;;  %v134_v12 = vpack.c.bf16 %v128_v11, %v127_v8  ;;  %v130_v14 = vld [vmem:[#allocation7 + $0x28] sm:$0xff]  ;;  %v131_v16 = vld [vmem:[#allocation7 + $0x30] sm:$0xff]  ;;  %v132_v17 = vld [vmem:[#allocation7 + $0x38] sm:$0xff] }
  0x3c   :  { %v135_v15 = vpack.c.bf16 %v130_v14, %v129_v13  ;;  %v136_v18 = vpack.c.bf16 %v132_v17, %v131_v16  ;;  %v217_v19 = vld [vmem:[%s431_s2] ss:$0 sm:$0xff] }
  0x3d   :  { %237 = vmatpush3.bf16.msra.mxu1 %v133_v10  ;;  %v219_v27 = vld [vmem:[%s433_s4] ss:$0 sm:$0xff] }
  0x3e   :  { %238 = vmatprep.subr.bf16.mxu1 %v330_v1  ;;  %233 = vmatmul.mubr.msk.bf16.vlgmr.msra.gmra.mrb[0].mxu0 %vm80_vm1, %v69_v9  ;;  %v221_v32 = vld [vmem:[%s434_s5] ss:$0 sm:$0xff] }
  0x3f   :  { %v222_v37 = vld [vmem:[#allocation2] ss:$0 sm:$0xff] }
  0x41   :  { %239 = vmatpush3.bf16.msra.mxu1 %v134_v12 }
  0x42   :  { %240 = vmatprep.subr.bf16.mxu1 %v330_v1 }
  0x45   :  { %241 = vmatpush3.bf16.msra.mxu1 %v135_v15 }
  0x46   :  { %242 = vmatprep.subr.bf16.mxu1 %v330_v1 }
  0x49   :  { %243 = vmatpush3.bf16.msra.mxu1 %v136_v18 }
 0x111   :  { %v118_v20 = vpop.f32.mrb[0].mxu0 }
 0x112   :  { %v119_v21 = vadd.f32 %v217_v19, %v118_v20  ;;  %v234_v22 = vpop.f32.mrb[1].mxu0 }
 0x113   :  { %v121_v23 = vpop.f32.mrb[2].mxu0 }
 0x114   :  { %v124_v24 = vmax.f32 %v119_v21, 0.0  ;;  %v235_v25 = vpop.f32.mrb[3].mxu0 }
 0x116   :  { %v137_v26 = vpack.c.bf16 %v124_v24, %v124_v24 }
 0x118   :  { %245 = vmatmul.mubr.msk.bf16.vlgmr.msra.gmra.mrb[0].mxu1 %vm145_vm2, %v137_v26 }
 0x1eb   :  { %v183_v28 = vpop.f32.mrb[0].mxu1 }
 0x1ec   :  { %v184_v29 = vadd.f32 %v219_v27, %v183_v28  ;;  %v246_v30 = vpop.f32.mrb[1].mxu1 }
 0x1ed   :  { %v186_v31 = vpop.f32.mrb[2].mxu1 }
 0x1ee   :  { %v189_v33 = vmax.f32 %v184_v29, 0.0  ;;  %v247_v34 = vpop.f32.mrb[3].mxu1 }
 0x1f0   :  { %v197_v35 = vmul.f32 %v221_v32, %v189_v33 }
 0x1f2   :  { %v198_v36 = vsel %vm145_vm2, %v197_v35, 0.0 }
 0x1f3   :  { %199 = vadd.xlane.f32.xlu0 %v198_v36 }
 0x280   :  { %v200_v38 = vpop.xlane.xlu0 %199 }
 0x281   :  { %v208_v39 = vadd.f32 %v222_v37, %v200_v38 }
 0x283   :  { %210 = vst.msk [vmem:[%s436_s7] sm:$0xff] %vm209_vm3, %v208_v39 }
 0x284   :  { %215 = vsyncpa [#allocation4], 1 }
 0x285   :  { %216 = vsyncpa [#allocation6], 1 }

</bundles_post_ra>
